<compile_context>
chip_gen: v6e
topology: v6e:2x2x1
jax: 0.10.0
libtpu: 0.0.40
codegen_flags: <defaults>
</compile_context>

<pallas_src>
import functools

import jax
import jax.numpy as jnp
from jax.experimental import pallas as pl
from jax.experimental.pallas import tpu as pltpu


def _frozen_bn_kernel(x_ref, scale_ref, shift_ref, o_ref):
    # scale/shift are (tr, 1) f32 column vectors -> broadcast over the lane
    # (spatial) axis.  Math runs in f32 even for bf16 activations; only the
    # final store casts to the activation dtype.
    x = x_ref[...]
    o_ref[...] = (x * scale_ref[...] + shift_ref[...]).astype(o_ref.dtype)


def _round_up(x, m):
    return ((x + m - 1) // m) * m


def frozen_batch_norm_2d(x, weight, bias, running_mean, running_var,
                         eps=1e-5, block_rows=512, block_hw=1024):
    """Equivalent of F.batch_norm(x, mean, var, weight, bias, training=False, eps).

    x: (N, C, H, W), NCHW like PyTorch (f32 or bf16).
    weight/bias/running_mean/running_var: (C,).
    """
    N, C, H, W = x.shape
    HW = H * W
    rows = N * C

    # ---- O(C) scalar prep in f32 (matches PyTorch: BN stats kept in f32). ----
    w32 = weight.astype(jnp.float32)
    b32 = bias.astype(jnp.float32)
    m32 = running_mean.astype(jnp.float32)
    v32 = running_var.astype(jnp.float32)
    scale = w32 * jax.lax.rsqrt(v32 + jnp.float32(eps))
    shift = b32 - m32 * scale

    # ---- Flatten to a lane-dense (rows, HW) slab; pad to (8, 128) multiples. ----
    rows_p = _round_up(rows, 8)
    hw_p = _round_up(HW, 128)

    x2 = x.reshape(rows, HW)
    if rows_p != rows or hw_p != HW:
        x2 = jnp.pad(x2, ((0, rows_p - rows), (0, hw_p - HW)))

    def per_row(p):
        p_rows = jnp.tile(p, (N,))                       # (N*C,) channel-major rows
        if rows_p != rows:
            p_rows = jnp.pad(p_rows, (0, rows_p - rows))
        return p_rows.reshape(rows_p, 1)                 # stays f32

    scale2 = per_row(scale)
    shift2 = per_row(shift)

    # ---- Tile sizes: multiples of (8, 128), capped at the padded dims. ----
    tr = min(_round_up(block_rows, 8), rows_p)
    tc = min(_round_up(block_hw, 128), hw_p)

    grid = (pl.cdiv(rows_p, tr), pl.cdiv(hw_p, tc))

    x_spec = pl.BlockSpec((tr, tc), lambda i, j: (i, j))
    p_spec = pl.BlockSpec((tr, 1), lambda i, j: (i, 0))

    out2 = pl.pallas_call(
        _frozen_bn_kernel,
        out_shape=jax.ShapeDtypeStruct((rows_p, hw_p), x.dtype),
        grid_spec=pltpu.PrefetchScalarGridSpec(
            num_scalar_prefetch=0,
            grid=grid,
            in_specs=[x_spec, p_spec, p_spec],
            out_specs=x_spec,
        ),
        compiler_params=pltpu.CompilerParams(
            dimension_semantics=("parallel", "parallel"),
            # ~9 MiB actually used with default tiles; leave headroom but stay
            # well under v7x's 64 MiB physical VMEM.
            vmem_limit_bytes=48 * 1024 * 1024,
        ),
    )(x2, scale2, shift2)

    if rows_p != rows or hw_p != HW:
        out2 = out2[:rows, :HW]
    return out2.reshape(N, C, H, W)


if __name__ == "__main__":
    key = jax.random.PRNGKey(0)
    kx, kw, kb, km, kv = jax.random.split(key, 5)

    N, C, H, W = 2, 4, 16, 16
    eps = 1e-5

    x = jax.random.normal(kx, (N, C, H, W), dtype=jnp.float32)
    # Non-trivial "frozen" buffers to actually exercise the math.
    weight = jax.random.normal(kw, (C,), dtype=jnp.float32) * 0.5 + 1.0
    bias = jax.random.normal(kb, (C,), dtype=jnp.float32) * 0.1
    running_mean = jax.random.normal(km, (C,), dtype=jnp.float32) * 0.2
    running_var = jax.random.uniform(kv, (C,), dtype=jnp.float32,
                                     minval=0.5, maxval=1.5)

    out = frozen_batch_norm_2d(x, weight, bias, running_mean, running_var, eps)
    out = jax.block_until_ready(out)

    # Pure-JAX reference (matches F.batch_norm(..., training=False)).
    scale = weight * jax.lax.rsqrt(running_var + eps)
    shift = bias - running_mean * scale
    ref = x * scale.reshape(1, C, 1, 1) + shift.reshape(1, C, 1, 1)

    assert out.shape == x.shape and out.dtype == x.dtype
    assert jnp.allclose(out, ref, atol=1e-5, rtol=1e-5), \
        f"max err {jnp.max(jnp.abs(out - ref))}"

    print("KERNEL_OK")
</pallas_src>

<mosaic_0001>
module attributes {stable_mosaic.version = 11 : i64} {
  func.func @_frozen_bn_kernel(%arg0: i32, %arg1: i32, %arg2: memref<8x256xf32, #tpu.memory_space<vmem>>, %arg3: memref<8x1xf32, #tpu.memory_space<vmem>>, %arg4: memref<8x1xf32, #tpu.memory_space<vmem>>, %arg5: memref<8x256xf32, #tpu.memory_space<vmem>>) attributes {dimension_semantics = [#tpu.dimension_semantics<parallel>, #tpu.dimension_semantics<parallel>], iteration_bounds = array<i64: 1, 1>, scalar_prefetch = 0 : i64, scratch_operands = 0 : i64, tpu.core_type = #tpu.core_type<tc>, window_params = [{transform_indices = @transform_0, window_bounds = array<i64: 8, 256>}, {transform_indices = @transform_1, window_bounds = array<i64: 8, 1>}, {transform_indices = @transform_2, window_bounds = array<i64: 8, 1>}, {transform_indices = @transform_3, window_bounds = array<i64: 8, 256>}]} {
    %c0 = arith.constant 0 : index
    %c0_0 = arith.constant 0 : index
    %0 = vector.load %arg2[%c0, %c0_0] : memref<8x256xf32, #tpu.memory_space<vmem>>, vector<8x256xf32>
    %c0_1 = arith.constant 0 : index
    %c0_2 = arith.constant 0 : index
    %1 = vector.load %arg3[%c0_1, %c0_2] : memref<8x1xf32, #tpu.memory_space<vmem>>, vector<8x1xf32>
    %2 = vector.broadcast %1 : vector<8x1xf32> to vector<8x256xf32>
    %3 = arith.mulf %0, %2 : vector<8x256xf32>
    %c0_3 = arith.constant 0 : index
    %c0_4 = arith.constant 0 : index
    %4 = vector.load %arg4[%c0_3, %c0_4] : memref<8x1xf32, #tpu.memory_space<vmem>>, vector<8x1xf32>
    %5 = vector.broadcast %4 : vector<8x1xf32> to vector<8x256xf32>
    %6 = arith.addf %3, %5 : vector<8x256xf32>
    %c0_5 = arith.constant 0 : index
    %c0_6 = arith.constant 0 : index
    %7 = vector.load %arg5[%c0_5, %c0_6] : memref<8x256xf32, #tpu.memory_space<vmem>>, vector<8x256xf32>
    tpu.vector_store %arg5[%c0_5, %c0_6], %6 {strides = array<i32>} : memref<8x256xf32, #tpu.memory_space<vmem>>, vector<8x256xf32>,
    return
  }
  func.func @transform_0(%arg0: i32, %arg1: i32) -> (i32, i32) {
    %c0_i32 = arith.constant 0 : i32
    return %arg0, %arg1 : i32, i32
  }
  func.func @transform_1(%arg0: i32, %arg1: i32) -> (i32, i32) {
    %c0_i32 = arith.constant 0 : i32
    %c0_i32_0 = arith.constant 0 : i32
    return %arg0, %c0_i32 : i32, i32
  }
  func.func @transform_2(%arg0: i32, %arg1: i32) -> (i32, i32) {
    %c0_i32 = arith.constant 0 : i32
    %c0_i32_0 = arith.constant 0 : i32
    return %arg0, %c0_i32 : i32, i32
  }
  func.func @transform_3(%arg0: i32, %arg1: i32) -> (i32, i32) {
    %c0_i32 = arith.constant 0 : i32
    return %arg0, %arg1 : i32, i32
  }
}

</mosaic_0001>

<bundles_post_ra>
// kernel: tpu_custom_call.1
= control target key start
LH: loop header
LB: loop body
LE: loop exit
PB: predicated region body
PF: predicated region fallthrough
CT: control target
= control target key end

     0   :  { %v74_v1 = vmov 0   ;;  %s111_s0 = inlined_call_operand.vmem [shape: f32[8,256], index: 0, kind: input, shape index: {}]   ;;  %s112_s1 = inlined_call_operand.vmem [shape: f32[8,1], index: 1, kind: input, shape index: {}]   ;;  %s113_s2 = inlined_call_operand.vmem [shape: f32[8,1], index: 2, kind: input, shape index: {}]   ;;  %s114_s3 = inlined_call_operand.hbm [shape: f32[8,256], index: 3, kind: output, shape index: {}]  }
   0x1   :  { %v17_v0 = vld [vmem:[%s112_s1] sm:$0xff]  ;;  %51 = vset.pattern.permute.xlu0 %v74_v1 }
   0x2   :  { %8 = vsyncpa [#allocation3], 0  ;;  %20 = vperm.xlu0 %51, %v17_v0   ;;  %v25_v2 = vld [vmem:[%s113_s2] sm:$0xff]  ;;  %v16_v5 = vld [vmem:[%s111_s0 + $0x8] sm:$0xff]  ;;  %s75_s20 = smov [#allocation2]  }
   0x3   :  { %v15_v4 = vld [vmem:[%s111_s0] sm:$0xff]  ;;  %s41_s1 = sshll.u32 %s75_s20, 4  ;;  %s42_s1 = int_to_ptr.vmem [resolvable:$true] %s41_s1 }
   0x4   :  { %s52_s2 = scalar_lea.vmem %s42_s1, 256  ;;  %p57_p1 = scmp.lt.s32.totalorder %s42_s1, %s42_s1 }
   0x5   :  { %p53_p0 = scmp.ne.s32.totalorder %s42_s1, %s52_s2  ;;  %p58_p2 = scmp.lt.s32.totalorder %s52_s2, %s52_s2 }
   0x6   :  { %28 = vperm.xlu0 %51, %v25_v2  }
   0x7   :  { %p59_p3 = por %p58_p2, %p57_p1 }
   0x9   :  { %p60_p4 = pnand %p59_p3, %p53_p0 }
  0x7d   :  { %v21_v3 = vpop.permute.xlu0 %20 }
  0x7e   :  { %v23_v6 = vmul.f32 %v21_v3, %v15_v4  ;;  %v24_v7 = vmul.f32 %v21_v3, %v16_v5 }
  0x81   :  { %v29_v8 = vpop.permute.xlu0 %28 }
  0x82   :  { %v31_v9 = vadd.f32 %v29_v8, %v23_v6  ;;  %v32_v10 = vadd.f32 %v29_v8, %v24_v7 }
  0x84   :  { %33 = vst [vmem:[#allocation2] sm:$0xff] %v31_v9  ;;  %34 = vst [vmem:[#allocation2 + $0x8] sm:$0xff] %v32_v10 }
  0x85   :  { %63 = shalt.err (!%p60_p4)
}
  0x86   :  { %44 = dma.vmem_to_hbm [thread:$0]  %s42_s1, 256, %s114_s3, [#allocation3]  }
  0x87   :  { %72 = dma.done.wait [#allocation3], 256  }
  0x88   :  { %73 = vsyncadd [#allocation3], 4294967040 }
  0x89   :  { %48 = vsyncpa [#allocation3], 1 }

</bundles_post_ra>
